<compile_context>
chip_gen: v5e
topology: v5e:2x2
jax: 0.10.0
libtpu: 0.0.40
codegen_flags: <defaults>
</compile_context>

<pallas_src>
import numpy as np
import jax
import jax.numpy as jnp
from jax.experimental import pallas as pl
from jax.experimental.pallas import tpu as pltpu

D_MODEL = 128     # small d_model consistent with the module (512 in original)
MAX_LEN = 64      # small max_len (5000 in original)
BATCH = 8         # number of timesteps


def make_positional_encoding(max_len: int, d_model: int) -> jnp.ndarray:
    """Standard transformer sinusoidal PE table, same formula as the torch module."""
    position = np.arange(max_len, dtype=np.float32)[:, None]                    # (L, 1)
    div_term = np.exp(
        np.arange(0, d_model, 2, dtype=np.float32) * (-np.log(10000.0) / d_model)
    )                                                                            # (D/2,)
    pe = np.zeros((max_len, d_model), dtype=np.float32)
    pe[:, 0::2] = np.sin(position * div_term)
    pe[:, 1::2] = np.cos(position * div_term)
    # torch stores (max_len, 1, d_model); we keep (max_len, d_model) and re-add the
    # singleton axis via the final (1, B, D) output reshape.
    return jnp.asarray(pe)


def time_embed_kernel(ts_ref, pe_ref, w1_ref, w2_ref, b_ref, o_ref):
    """Fused in-VMEM pe-row gather + 2-layer SiLU MLP (single grid step).

    ts_ref : VMEM (B, 1)  int32       timestep indices
    pe_ref : VMEM (L, D)  bf16        whole sinusoidal table (prefetched by BlockSpec)
    w1/w2  : VMEM (D, D)  bf16        pre-transposed (D_in, D_out) so kernel does x @ W
    b_ref  : VMEM (2, D)  f32         row 0 = b1, row 1 = b2
    o_ref  : VMEM (B, D)  f32
    """
    B = ts_ref.shape[0]
    max_len = pe_ref.shape[0]

    # Gather pe[timesteps] as a one-hot MXU matmul (exact: one 1.0 per row, f32 acc).
    # NOTE: an out-of-range timestep produces an all-zero one-hot row (no fault);
    # callers must pass 0 <= t < max_len to match PyTorch indexing semantics.
    ts = ts_ref[...]                                                   # (B, 1) int32
    col = jax.lax.broadcasted_iota(jnp.int32, (B, max_len), 1)         # (B, L)
    onehot = (ts == col).astype(pe_ref.dtype)                          # (B, L) bf16
    x = jnp.dot(onehot, pe_ref[...], preferred_element_type=jnp.float32)
    x = x.astype(jnp.bfloat16)                                         # exact bf16 round-trip

    # Layer 1: native bf16 MXU matmul, f32 accumulation; bias + SiLU in f32.
    h = jnp.dot(x, w1_ref[...], preferred_element_type=jnp.float32)    # (B, D) f32
    h = h + b_ref[0:1, :]
    h = h * jax.nn.sigmoid(h)                                          # SiLU (EUP in f32)

    # Layer 2: cast activation to bf16 and feed the MXU natively.
    o = jnp.dot(h.astype(jnp.bfloat16), w2_ref[...],
                preferred_element_type=jnp.float32)                    # (B, D) f32
    o_ref[...] = (o + b_ref[1:2, :]).astype(o_ref.dtype)


def timestep_encoding(timesteps, pe, w1, w2, b):
    """Full forward pass: gather + MLP fused in one pallas_call."""
    B = timesteps.shape[0]
    L, D = pe.shape
    ts2d = timesteps.astype(jnp.int32).reshape(B, 1)

    flops = 2 * B * L * D + 2 * (2 * B * D * D)               # gather matmul + 2 dense
    bytes_accessed = (B * 4                                   # timesteps
                      + L * D * pe.dtype.itemsize             # pe table
                      + 2 * D * D * w1.dtype.itemsize         # W1 + W2
                      + b.size * b.dtype.itemsize             # biases
                      + B * D * 4)                            # output

    out = pl.pallas_call(
        time_embed_kernel,
        out_shape=jax.ShapeDtypeStruct((B, D), jnp.float32),
        grid=(1,),
        in_specs=[
            pl.BlockSpec((B, 1), lambda i: (0, 0)),    # timesteps (int32)
            pl.BlockSpec((L, D), lambda i: (0, 0)),    # pe table (bf16, whole)
            pl.BlockSpec((D, D), lambda i: (0, 0)),    # W1 (bf16)
            pl.BlockSpec((D, D), lambda i: (0, 0)),    # W2 (bf16)
            pl.BlockSpec((2, D), lambda i: (0, 0)),    # [b1; b2] (f32)
        ],
        out_specs=pl.BlockSpec((B, D), lambda i: (0, 0)),
        compiler_params=pltpu.CompilerParams(dimension_semantics=("arbitrary",)),
        cost_estimate=pl.CostEstimate(flops=flops, transcendentals=B * D,
                                      bytes_accessed=bytes_accessed),
    )(ts2d, pe, w1, w2, b)

    # torch: (B, 1, D).permute(1, 0, 2) -> (1, B, D)
    return out.reshape(1, B, D)


def _reference(timesteps, pe, w1, w2, b):
    x = jnp.take(pe, timesteps, axis=0).astype(jnp.float32)
    h = jnp.dot(x, w1.astype(jnp.float32),
                precision=jax.lax.Precision.HIGHEST) + b[0:1, :]
    h = h * jax.nn.sigmoid(h)
    o = jnp.dot(h, w2.astype(jnp.float32),
                precision=jax.lax.Precision.HIGHEST) + b[1:2, :]
    return o.reshape(1, timesteps.shape[0], -1)


if __name__ == "__main__":
    key = jax.random.PRNGKey(0)
    k_w1, k_b1, k_w2, k_b2, k_t = jax.random.split(key, 5)

    # nn.Linear(d_model, d_model) parameters, stored pre-transposed (D_in, D_out).
    # Weights + pe table in bf16 (native MXU operands); biases/activations in f32.
    scale = 1.0 / np.sqrt(D_MODEL)
    w1 = jax.random.uniform(k_w1, (D_MODEL, D_MODEL), jnp.float32, -scale, scale).astype(jnp.bfloat16)
    w2 = jax.random.uniform(k_w2, (D_MODEL, D_MODEL), jnp.float32, -scale, scale).astype(jnp.bfloat16)
    b1 = jax.random.uniform(k_b1, (1, D_MODEL), jnp.float32, -scale, scale)
    b2 = jax.random.uniform(k_b2, (1, D_MODEL), jnp.float32, -scale, scale)
    b = jnp.concatenate([b1, b2], axis=0)                       # (2, D) merged biases

    pe = make_positional_encoding(MAX_LEN, D_MODEL).astype(jnp.bfloat16)

    # Diffusion timesteps: int indices into the PE table (must be in-range).
    timesteps = jax.random.randint(k_t, (BATCH,), 0, MAX_LEN, dtype=jnp.int32)

    out = timestep_encoding(timesteps, pe, w1, w2, b)
    out = jax.block_until_ready(out)

    ref = _reference(timesteps, pe, w1, w2, b)
    assert out.shape == (1, BATCH, D_MODEL), out.shape
    # Tolerance relaxed vs. the f32-activation variant: the second matmul now feeds
    # a bf16-rounded activation to the MXU (per perf review), costing ~8 mantissa bits.
    np.testing.assert_allclose(np.asarray(out), np.asarray(ref), rtol=1e-2, atol=1e-2)

    print("KERNEL_OK")
</pallas_src>

<mosaic_0001>
module attributes {stable_mosaic.version = 11 : i64} {
  func.func @time_embed_kernel(%arg0: i32, %arg1: memref<8x1xi32, #tpu.memory_space<vmem>>, %arg2: memref<64x128xbf16, #tpu.memory_space<vmem>>, %arg3: memref<128x128xbf16, #tpu.memory_space<vmem>>, %arg4: memref<128x128xbf16, #tpu.memory_space<vmem>>, %arg5: memref<2x128xf32, #tpu.memory_space<vmem>>, %arg6: memref<8x128xf32, #tpu.memory_space<vmem>>) attributes {dimension_semantics = [#tpu.dimension_semantics<arbitrary>], iteration_bounds = array<i64: 1>, scalar_prefetch = 0 : i64, scratch_operands = 0 : i64, tpu.core_type = #tpu.core_type<tc>, window_params = [{pipeline_mode = #tpu.pipeline_mode<synchronous>, transform_indices = @transform_0, window_bounds = array<i64: 8, 1>}, {pipeline_mode = #tpu.pipeline_mode<synchronous>, transform_indices = @transform_1, window_bounds = array<i64: 64, 128>}, {pipeline_mode = #tpu.pipeline_mode<synchronous>, transform_indices = @transform_2, window_bounds = array<i64: 128, 128>}, {pipeline_mode = #tpu.pipeline_mode<synchronous>, transform_indices = @transform_3, window_bounds = array<i64: 128, 128>}, {pipeline_mode = #tpu.pipeline_mode<synchronous>, transform_indices = @transform_4, window_bounds = array<i64: 2, 128>}, {pipeline_mode = #tpu.pipeline_mode<synchronous>, transform_indices = @transform_5, window_bounds = array<i64: 8, 128>}]} {
    %c0 = arith.constant 0 : index
    %c0_0 = arith.constant 0 : index
    %0 = vector.load %arg1[%c0, %c0_0] : memref<8x1xi32, #tpu.memory_space<vmem>>, vector<8x1xi32>
    %1 = tpu.iota {dimensions = array<i32: 1>} : vector<8x64xi32>
    %2 = vector.broadcast %0 : vector<8x1xi32> to vector<8x64xi32>
    %3 = arith.cmpi eq, %2, %1 : vector<8x64xi32>
    %4 = arith.extui %3 : vector<8x64xi1> to vector<8x64xi32>
    %5 = arith.sitofp %4 : vector<8x64xi32> to vector<8x64xf32>
    %6 = arith.truncf %5 : vector<8x64xf32> to vector<8x64xbf16>
    %c0_1 = arith.constant 0 : index
    %c0_2 = arith.constant 0 : index
    %7 = vector.load %arg2[%c0_1, %c0_2] : memref<64x128xbf16, #tpu.memory_space<vmem>>, vector<64x128xbf16>
    %cst = arith.constant dense<0.000000e+00> : vector<8x128xf32>
    %8 = tpu.matmul %6, %7, %cst {dimension_numbers = #tpu.dot_dimension_numbers<[1], [0], [0], [1], [0, 0, 1, 1], [], []>} : vector<8x64xbf16>, vector<64x128xbf16>, vector<8x128xf32> -> vector<8x128xf32>
    %9 = arith.truncf %8 : vector<8x128xf32> to vector<8x128xbf16>
    %c0_3 = arith.constant 0 : index
    %c0_4 = arith.constant 0 : index
    %10 = vector.load %arg3[%c0_3, %c0_4] : memref<128x128xbf16, #tpu.memory_space<vmem>>, vector<128x128xbf16>
    %cst_5 = arith.constant dense<0.000000e+00> : vector<8x128xf32>
    %11 = tpu.matmul %9, %10, %cst_5 {dimension_numbers = #tpu.dot_dimension_numbers<[1], [0], [0], [1], [0, 0, 1, 1], [], []>} : vector<8x128xbf16>, vector<128x128xbf16>, vector<8x128xf32> -> vector<8x128xf32>
    %c0_6 = arith.constant 0 : index
    %c0_7 = arith.constant 0 : index
    %12 = vector.load %arg5[%c0_6, %c0_7] : memref<2x128xf32, #tpu.memory_space<vmem>>, vector<1x128xf32>
    %13 = vector.broadcast %12 : vector<1x128xf32> to vector<8x128xf32>
    %14 = arith.addf %11, %13 : vector<8x128xf32>
    %15 = arith.negf %14 : vector<8x128xf32>
    %16 = math.exp %15 : vector<8x128xf32>
    %cst_8 = arith.constant 1.000000e+00 : f32
    %17 = vector.broadcast %cst_8 : f32 to vector<8x128xf32>
    %18 = arith.addf %17, %16 : vector<8x128xf32>
    %19 = arith.divf %17, %18 : vector<8x128xf32>
    %20 = arith.mulf %14, %19 : vector<8x128xf32>
    %21 = arith.truncf %20 : vector<8x128xf32> to vector<8x128xbf16>
    %c0_9 = arith.constant 0 : index
    %c0_10 = arith.constant 0 : index
    %22 = vector.load %arg4[%c0_9, %c0_10] : memref<128x128xbf16, #tpu.memory_space<vmem>>, vector<128x128xbf16>
    %cst_11 = arith.constant dense<0.000000e+00> : vector<8x128xf32>
    %23 = tpu.matmul %21, %22, %cst_11 {dimension_numbers = #tpu.dot_dimension_numbers<[1], [0], [0], [1], [0, 0, 1, 1], [], []>} : vector<8x128xbf16>, vector<128x128xbf16>, vector<8x128xf32> -> vector<8x128xf32>
    %c1 = arith.constant 1 : index
    %c0_12 = arith.constant 0 : index
    %24 = vector.load %arg5[%c1, %c0_12] : memref<2x128xf32, #tpu.memory_space<vmem>>, vector<1x128xf32>
    %25 = vector.broadcast %24 : vector<1x128xf32> to vector<8x128xf32>
    %26 = arith.addf %23, %25 : vector<8x128xf32>
    %c0_13 = arith.constant 0 : index
    %c0_14 = arith.constant 0 : index
    %27 = vector.load %arg6[%c0_13, %c0_14] : memref<8x128xf32, #tpu.memory_space<vmem>>, vector<8x128xf32>
    tpu.vector_store %arg6[%c0_13, %c0_14], %26 {strides = array<i32>} : memref<8x128xf32, #tpu.memory_space<vmem>>, vector<8x128xf32>,
    return
  }
  func.func @transform_0(%arg0: i32) -> (i32, i32) {
    %c0_i32 = arith.constant 0 : i32
    %c0_i32_0 = arith.constant 0 : i32
    %c0_i32_1 = arith.constant 0 : i32
    return %c0_i32, %c0_i32_0 : i32, i32
  }
  func.func @transform_1(%arg0: i32) -> (i32, i32) {
    %c0_i32 = arith.constant 0 : i32
    %c0_i32_0 = arith.constant 0 : i32
    %c0_i32_1 = arith.constant 0 : i32
    return %c0_i32, %c0_i32_0 : i32, i32
  }
  func.func @transform_2(%arg0: i32) -> (i32, i32) {
    %c0_i32 = arith.constant 0 : i32
    %c0_i32_0 = arith.constant 0 : i32
    %c0_i32_1 = arith.constant 0 : i32
    return %c0_i32, %c0_i32_0 : i32, i32
  }
  func.func @transform_3(%arg0: i32) -> (i32, i32) {
    %c0_i32 = arith.constant 0 : i32
    %c0_i32_0 = arith.constant 0 : i32
    %c0_i32_1 = arith.constant 0 : i32
    return %c0_i32, %c0_i32_0 : i32, i32
  }
  func.func @transform_4(%arg0: i32) -> (i32, i32) {
    %c0_i32 = arith.constant 0 : i32
    %c0_i32_0 = arith.constant 0 : i32
    %c0_i32_1 = arith.constant 0 : i32
    return %c0_i32, %c0_i32_0 : i32, i32
  }
  func.func @transform_5(%arg0: i32) -> (i32, i32) {
    %c0_i32 = arith.constant 0 : i32
    %c0_i32_0 = arith.constant 0 : i32
    %c0_i32_1 = arith.constant 0 : i32
    return %c0_i32, %c0_i32_0 : i32, i32
  }
}

</mosaic_0001>

<bundles_post_ra>
// kernel: tpu_custom_call.1
= control target key start
LH: loop header
LB: loop body
LE: loop exit
PB: predicated region body
PF: predicated region fallthrough
CT: control target
= control target key end

     0   :  { %10 = vsyncpa [#allocation3], 0  ;;  %s606_s0 = inlined_call_operand.vmem [shape: s32[8,1], index: 0, kind: input, shape index: {}]   ;;  %s607_s1 = inlined_call_operand.hbm [shape: bf16[64,128], index: 1, kind: input, shape index: {}]   ;;  %s608_s2 = inlined_call_operand.hbm [shape: bf16[128,128], index: 2, kind: input, shape index: {}]   ;;  %s609_s3 = inlined_call_operand.hbm [shape: bf16[128,128], index: 3, kind: input, shape index: {}]   ;;  %s610_s4 = inlined_call_operand.vmem [shape: f32[2,128], index: 4, kind: input, shape index: {}]   ;;  %s611_s5 = inlined_call_operand.hbm [shape: f32[8,128], index: 5, kind: output, shape index: {}]  }
   0x1   :  { %11 = vsyncpa [#allocation6], 0 }
   0x2   :  { %12 = vsyncpa [#allocation4], 0  ;;  %s32_s20 = sshll.u32 %s608_s2, 4  ;;  %s547_s21 = smov [#allocation5]   ;;  %s33_s20 = int_to_ptr.hbm [resolvable:$true] %s32_s20 }
   0x3   :  { %s34_s22 = sshll.u32 %s547_s21, 4  ;;  %s19_s25 = sshll.u32 %s607_s1, 4  ;;  %s35_s22 = int_to_ptr.vmem [resolvable:$true] %s34_s22  ;;  %s20_s25 = int_to_ptr.hbm [resolvable:$true] %s19_s25 }
   0x4   :  { %s548_s26 = smov 64   ;;  %s549_s27 = smov 4  }
   0x5   :  { %40 = dma.hbm_to_vmem [thread:$0]  %s33_s20, 1024, %s35_s22, [#allocation6], %s548_s26, %s548_s26, %s549_s27  }
   0x6   :  { %s550_s28 = smov [#allocation2]   ;;  %s45_s7 = sshll.u32 %s609_s3, 4  ;;  %s46_s7 = int_to_ptr.hbm [resolvable:$true] %s45_s7 }
   0x7   :  { %s21_s29 = sshll.u32 %s550_s28, 4  ;;  %s551_s2 = smov [#allocation7]   ;;  %s22_s29 = int_to_ptr.vmem [resolvable:$true] %s21_s29 }
   0x8   :  { %27 = dma.hbm_to_vmem [thread:$0]  %s20_s25, 512, %s22_s29, [#allocation3], %s548_s26, %s548_s26, %s549_s27  }
   0x9   :  { %s47_s8 = sshll.u32 %s551_s2, 4  ;;  %s48_s8 = int_to_ptr.vmem [resolvable:$true] %s47_s8 }
   0xa   :  { %53 = dma.hbm_to_vmem [thread:$0]  %s46_s7, 1024, %s48_s8, [#allocation6], %s548_s26, %s548_s26, %s549_s27  }
   0xb   :  { %541 = dma.done.wait [#allocation3], 512  }
   0xc   :  { %542 = vsyncadd [#allocation3], 4294966784 }
   0xd   :  { %543 = dma.done.wait [#allocation6], 2048  }
   0xe   :  { %544 = vsyncadd [#allocation6], 4294965248  ;;  %v552_v0 = vmov 0   ;;  %v69_v1 = vld [vmem:[%s606_s0] sm:$0xff]  ;;  %v413_v2 = vld [vmem:[#allocation2 + $0x18] sm:$0xff]  ;;  %v70_v12 = vlaneseq  ;;  %v553_v16 = vmov 0.0  }
   0xf   :  { %438 = vset.pattern.permute.xlu0 %v552_v0  ;;  %119 = vmatpush.bf16.msra.mxu0 %v413_v2  ;;  %v412_v3 = vld [vmem:[#allocation2 + $0x10] sm:$0xff]  ;;  %v411_v4 = vld [vmem:[#allocation2 + $0x8] sm:$0xff]  ;;  %v410_v5 = vld [vmem:[#allocation2] sm:$0xff]  ;;  %vm111_vm1 = vcmask 523264   ;;  %s554_s12 = smov [#allocation8]   ;;  %s316_s16 = sshll.u32 %s611_s5, 4  ;;  %s317_s16 = int_to_ptr.hbm [resolvable:$true] %s316_s16 }
  0x10   :  { %73 = vperm.xlu0 %438, %v69_v1   ;;  %v421_v6 = vld [vmem:[#allocation5 + $0x38] sm:$0xff]  ;;  %v420_v7 = vld [vmem:[#allocation5 + $0x30] sm:$0xff]  ;;  %v419_v8 = vld [vmem:[#allocation5 + $0x28] sm:$0xff]  ;;  %v71_v14 = vand.u32 127, %v70_v12  ;;  %s314_s13 = sshll.u32 %s554_s12, 4  ;;  %s315_s13 = int_to_ptr.vmem [resolvable:$true] %s314_s13 }
  0x11   :  { %195 = vmatpush.bf16.msra.mxu1 %v421_v6  ;;  %v418_v9 = vld [vmem:[#allocation5 + $0x20] sm:$0xff]  ;;  %v417_v10 = vld [vmem:[#allocation5 + $0x18] sm:$0xff]  ;;  %v416_v11 = vld [vmem:[#allocation5 + $0x10] sm:$0xff] }
  0x12   :  { %v415_v13 = vld [vmem:[#allocation5 + $0x8] sm:$0xff]  ;;  %v414_v19 = vld [vmem:[#allocation5] sm:$0xff]  ;;  %v429_v23 = vld [vmem:[#allocation7 + $0x38] sm:$0xff] }
  0x13   :  { %120 = vmatpush.bf16.msra.mxu0 %v412_v3  ;;  %295 = vmatpush.bf16.msra.mxu2 %v429_v23  ;;  %v428_v24 = vld [vmem:[#allocation7 + $0x30] sm:$0xff]  ;;  %v427_v25 = vld [vmem:[#allocation7 + $0x28] sm:$0xff]  ;;  %v426_v26 = vld [vmem:[#allocation7 + $0x20] sm:$0xff] }
  0x14   :  { %v425_v27 = vld [vmem:[#allocation7 + $0x18] sm:$0xff]  ;;  %v424_v28 = vld [vmem:[#allocation7 + $0x10] sm:$0xff]  ;;  %v423_v29 = vld [vmem:[#allocation7 + $0x8] sm:$0xff] }
  0x15   :  { %196 = vmatpush.bf16.msra.mxu1 %v420_v7  ;;  %v422_v30 = vld [vmem:[#allocation7] sm:$0xff] }
  0x16   :  { %v439_v31 = vld [vmem:[%s610_s4] ss:$0 sm:$0xff]  ;;  %v440_v50 = vld [vmem:[%s610_s4 + $0x1] ss:$0 sm:$0xff] }
  0x17   :  { %121 = vmatpush.bf16.msra.mxu0 %v411_v4  ;;  %296 = vmatpush.bf16.msra.mxu2 %v428_v24 }
  0x19   :  { %197 = vmatpush.bf16.msra.mxu1 %v419_v8 }
  0x1b   :  { %122 = vmatpush.bf16.msra.mxu0 %v410_v5  ;;  %297 = vmatpush.bf16.msra.mxu2 %v427_v25 }
  0x1d   :  { %198 = vmatpush.bf16.msra.mxu1 %v418_v9 }
  0x1f   :  { %298 = vmatpush.bf16.msra.mxu2 %v426_v26 }
  0x21   :  { %199 = vmatpush.bf16.msra.mxu1 %v417_v10 }
  0x23   :  { %299 = vmatpush.bf16.msra.mxu2 %v425_v27 }
  0x25   :  { %200 = vmatpush.bf16.msra.mxu1 %v416_v11 }
  0x27   :  { %300 = vmatpush.bf16.msra.mxu2 %v424_v28 }
  0x29   :  { %201 = vmatpush.bf16.msra.mxu1 %v415_v13 }
  0x2b   :  { %301 = vmatpush.bf16.msra.mxu2 %v423_v29 }
  0x2d   :  { %202 = vmatpush.bf16.msra.mxu1 %v414_v19 }
  0x2f   :  { %302 = vmatpush.bf16.msra.mxu2 %v422_v30 }
  0x82   :  { %v74_v15 = vpop.permute.xlu0 %73 }
  0x83   :  { %vm75_vm0 = vcmp.eq.s32.totalorder %v74_v15, %v71_v14 }
  0x84   :  { %v327_v17 = vsel %vm75_vm0, 1.0, %v553_v16 }
  0x85   :  { %v78_v18 = vpack.c.bf16 %v327_v17, %v327_v17 }
  0x87   :  { %344 = vmatmul.msk.bf16.vlgmr.msra.gmra.mxu0 %vm111_vm1, %v78_v18 }
 0x104   :  { %v124_v20 = vpop.f32.mrf.mxu0 }
 0x105   :  { %v128_v21 = vpack.c.bf16 %v124_v20, %v124_v20 }
 0x107   :  { %203 = vmatmul.bf16.vlgmr.msra.gmra.mxu1 %v128_v21 }
 0x10c   :  { %v126_v22 = vpop.f32.mrf.mxu0 }
 0x184   :  { %v204_v32 = vpop.f32.mrf.mxu1 }
 0x185   :  { %v205_v33 = vadd.f32 %v439_v31, %v204_v32 }
 0x187   :  { %v377_v34 = vmul.f32 -1.442695, %v205_v33 }
 0x189   :  { %441 = vpow2.f32 %v377_v34 }
 0x18c   :  { %v206_v35 = vpop.f32.mrf.mxu1 }
 0x18f   :  { %v442_v36 = vpop.eup %441 }
 0x190   :  { %v211_v37 = vadd.f32 1.0, %v442_v36 }
 0x192   :  { %443 = vrcp.f32 %v211_v37  ;;  %v223_v41 = vand.u32 2147483648, %v211_v37  ;;  %v221_v43 = vand.u32 2147483647, %v211_v37  ;;  %vm217_vm3 = vweird.f32 %v211_v37 }
 0x194   :  { %v224_v45 = vor.u32 1.1754944e-38, %v223_v41  ;;  %vm222_vm5 = vcmp.eq.f32.partialorder %v221_v43, 8.507059e+37 }
 0x198   :  { %v444_v38 = vpop.eup %443 }
 0x199   :  { %v213_v39 = vmul.f32 %v444_v38, %v211_v37  ;;  %vm218_vm2 = vweird.f32 %v444_v38 }
 0x19a   :  { %vm219_vm4 = vmor %vm217_vm3, %vm218_vm2 }
 0x19b   :  { %v214_v40 = vsub.f32 1.0, %v213_v39 }
 0x19d   :  { %v215_v42 = vmul.f32 %v444_v38, %v214_v40 }
 0x19f   :  { %v216_v44 = vadd.f32 %v444_v38, %v215_v42 }
 0x1a1   :  { %v220_v46 = vsel %vm219_vm4, %v444_v38, %v216_v44 }
 0x1a2   :  { %v225_v47 = vsel %vm222_vm5, %v224_v45, %v220_v46 }
 0x1a3   :  { %v227_v48 = vmul.f32 %v225_v47, %v205_v33 }
 0x1a5   :  { %v228_v49 = vpack.c.bf16 %v227_v48, %v227_v48 }
 0x1a7   :  { %303 = vmatmul.bf16.vlgmr.msra.gmra.mxu2 %v228_v49 }
 0x22a   :  { %v304_v51 = vpop.f32.mrf.mxu2 }
 0x22b   :  { %v305_v52 = vadd.f32 %v440_v50, %v304_v51 }
 0x22d   :  { %308 = vst [vmem:[#allocation8] sm:$0xff] %v305_v52 }
 0x22e   :  { %319 = dma.vmem_to_hbm [thread:$0]  %s315_s13, 128, %s317_s16, [#allocation4]  }
 0x232   :  { %v306_v53 = vpop.f32.mrf.mxu2 }
 0x233   :  { %545 = dma.done.wait [#allocation4], 128  }
 0x234   :  { %546 = vsyncadd [#allocation4], 4294967168 }
 0x235   :  { %324 = vsyncpa [#allocation3], 1 }
 0x236   :  { %325 = vsyncpa [#allocation6], 1 }
 0x237   :  { %326 = vsyncpa [#allocation4], 1 }

</bundles_post_ra>
